<compile_context>
chip_gen: v7x
topology: tpu7x:2x2x1
jax: 0.10.0
libtpu: 0.0.40
codegen_flags: <defaults>
</compile_context>

<pallas_src>
import jax
import jax.numpy as jnp
from jax.experimental import pallas as pl
from jax.experimental.pallas import tpu as pltpu


def _mlp_kernel(x_ref, w1_ref, b1_ref, w2_ref, b2_ref, w3_ref, b3_ref, o_ref):
    # x_ref: (20, T) f32, batch on lanes.  Input ReLU on the VPU in f32,
    # cast to bf16 only for the MXU operand (single-pass vmatmul).
    x = jnp.maximum(x_ref[...], 0.0).astype(jnp.bfloat16)            # (20, T)

    # fc1: (40,20) @ (20,T) -> (40,T), f32 accumulate, bias broadcast on lanes.
    h1 = jnp.dot(w1_ref[...], x, preferred_element_type=jnp.float32) + b1_ref[...]
    h1 = jnp.maximum(h1, 0.0).astype(jnp.bfloat16)                    # (40, T)

    # fc2: (80,40) @ (40,T) -> (80,T)
    h2 = jnp.dot(w2_ref[...], h1, preferred_element_type=jnp.float32) + b2_ref[...]
    h2 = jnp.maximum(h2, 0.0).astype(jnp.bfloat16)                    # (80, T)

    # fc3: (2,80) @ (80,T) -> (2,T)  (lane-dense output block)
    z = jnp.dot(w3_ref[...], h2, preferred_element_type=jnp.float32) + b3_ref[...]

    # Softplus, PyTorch semantics (beta=1, threshold=20 -> linear above 20).
    sp = jnp.log1p(jnp.exp(jnp.minimum(z, 20.0)))
    o_ref[...] = jnp.where(z > 20.0, z, sp)


def _round_up(n, m):
    return ((n + m - 1) // m) * m


def comparison_fc_small(x, params, *, tile_cols=4096):
    """Forward pass of Comparison_fc_small.

    x: any shape whose total size is divisible by 20 (matches torch's
       `x.view(-1, 20)`).  Returns (N, 2) float32.
    params: PyTorch-native layout — weights (out, in), biases (out,).
    tile_cols: batch columns per grid step (lane tile); multiple of 128.
    """
    w1, b1, w2, b2, w3, b3 = params

    # Glue: view(-1, 20), then feature-major layout (batch on lanes).
    x2d = x.reshape(-1, 20).astype(jnp.float32)
    n = x2d.shape[0]
    xT = x2d.T                                                   # (20, N)

    # Lane tiling: multiple of 128.  With the default tile, large batches get
    # multiple "parallel" grid steps and shard across both v7x TensorCores.
    tile = max(128, min(_round_up(int(tile_cols), 128), _round_up(n, 128)))
    n_pad = _round_up(n, tile)
    if n_pad != n:
        xT = jnp.pad(xT, ((0, 0), (0, n_pad - n)))               # zero cols, sliced off
    grid = (n_pad // tile,)

    # Single-pass bf16 MXU operands; biases kept f32, shaped for lane broadcast.
    w1b = w1.astype(jnp.bfloat16)
    w2b = w2.astype(jnp.bfloat16)
    w3b = w3.astype(jnp.bfloat16)
    b1c = b1.reshape(-1, 1).astype(jnp.float32)                  # (40, 1)
    b2c = b2.reshape(-1, 1).astype(jnp.float32)                  # (80, 1)
    b3c = b3.reshape(-1, 1).astype(jnp.float32)                  # (2, 1)

    out_t = pl.pallas_call(
        _mlp_kernel,
        out_shape=jax.ShapeDtypeStruct((2, n_pad), jnp.float32),
        grid=grid,
        in_specs=[
            # x_T: tiled over the batch (lane) axis -> pipelined HBM->VMEM DMA.
            pl.BlockSpec((20, tile), lambda i: (0, i)),
            # Weights/biases: constant block index -> DMA'd once, stay resident.
            pl.BlockSpec((40, 20), lambda i: (0, 0)),            # w1
            pl.BlockSpec((40, 1), lambda i: (0, 0)),             # b1
            pl.BlockSpec((80, 40), lambda i: (0, 0)),            # w2
            pl.BlockSpec((80, 1), lambda i: (0, 0)),             # b2
            pl.BlockSpec((2, 80), lambda i: (0, 0)),             # w3
            pl.BlockSpec((2, 1), lambda i: (0, 0)),              # b3
        ],
        out_specs=pl.BlockSpec((2, tile), lambda i: (0, i)),     # lane-dense store
        compiler_params=pltpu.CompilerParams(
            dimension_semantics=("parallel",),                   # megacore-safe batch axis
            vmem_limit_bytes=32 * 1024 * 1024,                   # working set << 32 MiB
        ),
    )(xT, w1b, b1c, w2b, b2c, w3b, b3c)

    # Glue: back to PyTorch's (N, 2) layout, drop padded columns.
    return out_t[:, :n].T


def init_params(key):
    """PyTorch nn.Linear-style init: weight (out, in), bias (out,),
    uniform(-1/sqrt(in), 1/sqrt(in))."""
    def linear(key, fan_in, fan_out):
        kw, kb = jax.random.split(key)
        bound = 1.0 / jnp.sqrt(fan_in)
        w = jax.random.uniform(kw, (fan_out, fan_in), jnp.float32, -bound, bound)
        b = jax.random.uniform(kb, (fan_out,), jnp.float32, -bound, bound)
        return w, b

    k1, k2, k3 = jax.random.split(key, 3)
    w1, b1 = linear(k1, 20, 40)
    w2, b2 = linear(k2, 40, 80)
    w3, b3 = linear(k3, 80, 2)
    return (w1, b1, w2, b2, w3, b3)


def _reference(x, params):
    """Pure-JAX f32 reference (HIGHEST precision matmuls) of the PyTorch forward."""
    w1, b1, w2, b2, w3, b3 = params
    hp = lambda a, b: jnp.dot(a, b, precision=jax.lax.Precision.HIGHEST)
    h = jnp.maximum(x.reshape(-1, 20).astype(jnp.float32), 0.0)
    h = jnp.maximum(hp(h, w1.T) + b1, 0.0)
    h = jnp.maximum(hp(h, w2.T) + b2, 0.0)
    z = hp(h, w3.T) + b3
    return jnp.where(z > 20.0, z, jnp.log1p(jnp.exp(jnp.minimum(z, 20.0))))


if __name__ == "__main__":
    key = jax.random.PRNGKey(0)
    kx1, kx2, kp = jax.random.split(key, 3)
    params = init_params(kp)

    # --- Test A: small input, single grid step ------------------------------
    x_a = jax.random.normal(kx1, (2, 4, 20), dtype=jnp.float32)     # 8 rows of 20
    out_a = jax.block_until_ready(comparison_fc_small(x_a, params))
    ref_a = _reference(x_a, params)
    assert out_a.shape == (8, 2), out_a.shape
    # bf16 MXU operands -> compare against f32 reference with a modest tolerance.
    assert jnp.allclose(out_a, ref_a, atol=2e-2, rtol=2e-2), "mismatch (A)"

    # --- Test B: multiple grid steps + padded tail (forced small tile) ------
    x_b = jax.random.normal(kx2, (6, 50, 20), dtype=jnp.float32)    # 300 rows
    out_b = jax.block_until_ready(
        comparison_fc_small(x_b, params, tile_cols=128))             # grid=3, tail pad
    ref_b = _reference(x_b, params)
    assert out_b.shape == (300, 2), out_b.shape
    assert jnp.allclose(out_b, ref_b, atol=2e-2, rtol=2e-2), "mismatch (B)"

    print("KERNEL_OK")
</pallas_src>

<mosaic_0001>
module attributes {stable_mosaic.version = 11 : i64} {
  func.func @_mlp_kernel(%arg0: i32, %arg1: memref<20x128xf32, #tpu.memory_space<vmem>>, %arg2: memref<40x20xbf16, #tpu.memory_space<vmem>>, %arg3: memref<40x1xf32, #tpu.memory_space<vmem>>, %arg4: memref<80x40xbf16, #tpu.memory_space<vmem>>, %arg5: memref<80x1xf32, #tpu.memory_space<vmem>>, %arg6: memref<2x80xbf16, #tpu.memory_space<vmem>>, %arg7: memref<2x1xf32, #tpu.memory_space<vmem>>, %arg8: memref<2x128xf32, #tpu.memory_space<vmem>>) attributes {dimension_semantics = [#tpu.dimension_semantics<parallel>], iteration_bounds = array<i64: 1>, scalar_prefetch = 0 : i64, scratch_operands = 0 : i64, tpu.core_type = #tpu.core_type<tc>, window_params = [{transform_indices = @transform_0, window_bounds = array<i64: 20, 128>}, {pipeline_mode = #tpu.pipeline_mode<synchronous>, transform_indices = @transform_1, window_bounds = array<i64: 40, 20>}, {pipeline_mode = #tpu.pipeline_mode<synchronous>, transform_indices = @transform_2, window_bounds = array<i64: 40, 1>}, {pipeline_mode = #tpu.pipeline_mode<synchronous>, transform_indices = @transform_3, window_bounds = array<i64: 80, 40>}, {pipeline_mode = #tpu.pipeline_mode<synchronous>, transform_indices = @transform_4, window_bounds = array<i64: 80, 1>}, {pipeline_mode = #tpu.pipeline_mode<synchronous>, transform_indices = @transform_5, window_bounds = array<i64: 2, 80>}, {pipeline_mode = #tpu.pipeline_mode<synchronous>, transform_indices = @transform_6, window_bounds = array<i64: 2, 1>}, {transform_indices = @transform_7, window_bounds = array<i64: 2, 128>}]} {
    %c0 = arith.constant 0 : index
    %c0_0 = arith.constant 0 : index
    %0 = vector.load %arg1[%c0, %c0_0] : memref<20x128xf32, #tpu.memory_space<vmem>>, vector<20x128xf32>
    %cst = arith.constant 0.000000e+00 : f32
    %1 = vector.broadcast %cst : f32 to vector<20x128xf32>
    %2 = arith.maximumf %0, %1 : vector<20x128xf32>
    %3 = arith.truncf %2 : vector<20x128xf32> to vector<20x128xbf16>
    %c0_1 = arith.constant 0 : index
    %c0_2 = arith.constant 0 : index
    %4 = vector.load %arg2[%c0_1, %c0_2] : memref<40x20xbf16, #tpu.memory_space<vmem>>, vector<40x20xbf16>
    %cst_3 = arith.constant dense<0.000000e+00> : vector<40x128xf32>
    %5 = tpu.matmul %4, %3, %cst_3 {dimension_numbers = #tpu.dot_dimension_numbers<[1], [0], [0], [1], [0, 0, 1, 1], [], []>} : vector<40x20xbf16>, vector<20x128xbf16>, vector<40x128xf32> -> vector<40x128xf32>
    %c0_4 = arith.constant 0 : index
    %c0_5 = arith.constant 0 : index
    %6 = vector.load %arg3[%c0_4, %c0_5] : memref<40x1xf32, #tpu.memory_space<vmem>>, vector<40x1xf32>
    %7 = vector.broadcast %6 : vector<40x1xf32> to vector<40x128xf32>
    %8 = arith.addf %5, %7 : vector<40x128xf32>
    %cst_6 = arith.constant 0.000000e+00 : f32
    %9 = vector.broadcast %cst_6 : f32 to vector<40x128xf32>
    %10 = arith.maximumf %8, %9 : vector<40x128xf32>
    %11 = arith.truncf %10 : vector<40x128xf32> to vector<40x128xbf16>
    %c0_7 = arith.constant 0 : index
    %c0_8 = arith.constant 0 : index
    %12 = vector.load %arg4[%c0_7, %c0_8] : memref<80x40xbf16, #tpu.memory_space<vmem>>, vector<80x40xbf16>
    %cst_9 = arith.constant dense<0.000000e+00> : vector<80x128xf32>
    %13 = tpu.matmul %12, %11, %cst_9 {dimension_numbers = #tpu.dot_dimension_numbers<[1], [0], [0], [1], [0, 0, 1, 1], [], []>} : vector<80x40xbf16>, vector<40x128xbf16>, vector<80x128xf32> -> vector<80x128xf32>
    %c0_10 = arith.constant 0 : index
    %c0_11 = arith.constant 0 : index
    %14 = vector.load %arg5[%c0_10, %c0_11] : memref<80x1xf32, #tpu.memory_space<vmem>>, vector<80x1xf32>
    %15 = vector.broadcast %14 : vector<80x1xf32> to vector<80x128xf32>
    %16 = arith.addf %13, %15 : vector<80x128xf32>
    %cst_12 = arith.constant 0.000000e+00 : f32
    %17 = vector.broadcast %cst_12 : f32 to vector<80x128xf32>
    %18 = arith.maximumf %16, %17 : vector<80x128xf32>
    %19 = arith.truncf %18 : vector<80x128xf32> to vector<80x128xbf16>
    %c0_13 = arith.constant 0 : index
    %c0_14 = arith.constant 0 : index
    %20 = vector.load %arg6[%c0_13, %c0_14] : memref<2x80xbf16, #tpu.memory_space<vmem>>, vector<2x80xbf16>
    %cst_15 = arith.constant dense<0.000000e+00> : vector<2x128xf32>
    %21 = tpu.matmul %20, %19, %cst_15 {dimension_numbers = #tpu.dot_dimension_numbers<[1], [0], [0], [1], [0, 0, 1, 1], [], []>} : vector<2x80xbf16>, vector<80x128xbf16>, vector<2x128xf32> -> vector<2x128xf32>
    %c0_16 = arith.constant 0 : index
    %c0_17 = arith.constant 0 : index
    %22 = vector.load %arg7[%c0_16, %c0_17] : memref<2x1xf32, #tpu.memory_space<vmem>>, vector<2x1xf32>
    %23 = vector.broadcast %22 : vector<2x1xf32> to vector<2x128xf32>
    %24 = arith.addf %21, %23 : vector<2x128xf32>
    %cst_18 = arith.constant 2.000000e+01 : f32
    %25 = vector.broadcast %cst_18 : f32 to vector<2x128xf32>
    %26 = arith.minimumf %24, %25 : vector<2x128xf32>
    %27 = math.exp %26 : vector<2x128xf32>
    %28 = math.log1p %27 : vector<2x128xf32>
    %cst_19 = arith.constant 2.000000e+01 : f32
    %29 = vector.broadcast %cst_19 : f32 to vector<2x128xf32>
    %30 = arith.cmpf ogt, %24, %29 : vector<2x128xf32>
    %31 = arith.select %30, %24, %28 : vector<2x128xi1>, vector<2x128xf32>
    %c0_20 = arith.constant 0 : index
    %c0_21 = arith.constant 0 : index
    %32 = vector.load %arg8[%c0_20, %c0_21] : memref<2x128xf32, #tpu.memory_space<vmem>>, vector<2x128xf32>
    tpu.vector_store %arg8[%c0_20, %c0_21], %31 {strides = array<i32>} : memref<2x128xf32, #tpu.memory_space<vmem>>, vector<2x128xf32>,
    return
  }
  func.func @transform_0(%arg0: i32) -> (i32, i32) {
    %c0_i32 = arith.constant 0 : i32
    %c0_i32_0 = arith.constant 0 : i32
    return %c0_i32, %arg0 : i32, i32
  }
  func.func @transform_1(%arg0: i32) -> (i32, i32) {
    %c0_i32 = arith.constant 0 : i32
    %c0_i32_0 = arith.constant 0 : i32
    %c0_i32_1 = arith.constant 0 : i32
    return %c0_i32, %c0_i32_0 : i32, i32
  }
  func.func @transform_2(%arg0: i32) -> (i32, i32) {
    %c0_i32 = arith.constant 0 : i32
    %c0_i32_0 = arith.constant 0 : i32
    %c0_i32_1 = arith.constant 0 : i32
    return %c0_i32, %c0_i32_0 : i32, i32
  }
  func.func @transform_3(%arg0: i32) -> (i32, i32) {
    %c0_i32 = arith.constant 0 : i32
    %c0_i32_0 = arith.constant 0 : i32
    %c0_i32_1 = arith.constant 0 : i32
    return %c0_i32, %c0_i32_0 : i32, i32
  }
  func.func @transform_4(%arg0: i32) -> (i32, i32) {
    %c0_i32 = arith.constant 0 : i32
    %c0_i32_0 = arith.constant 0 : i32
    %c0_i32_1 = arith.constant 0 : i32
    return %c0_i32, %c0_i32_0 : i32, i32
  }
  func.func @transform_5(%arg0: i32) -> (i32, i32) {
    %c0_i32 = arith.constant 0 : i32
    %c0_i32_0 = arith.constant 0 : i32
    %c0_i32_1 = arith.constant 0 : i32
    return %c0_i32, %c0_i32_0 : i32, i32
  }
  func.func @transform_6(%arg0: i32) -> (i32, i32) {
    %c0_i32 = arith.constant 0 : i32
    %c0_i32_0 = arith.constant 0 : i32
    %c0_i32_1 = arith.constant 0 : i32
    return %c0_i32, %c0_i32_0 : i32, i32
  }
  func.func @transform_7(%arg0: i32) -> (i32, i32) {
    %c0_i32 = arith.constant 0 : i32
    %c0_i32_0 = arith.constant 0 : i32
    return %c0_i32, %arg0 : i32, i32
  }
}

</mosaic_0001>

<bundles_post_ra>
// kernel: tpu_custom_call.1
= control target key start
LH: loop header
LB: loop body
LE: loop exit
PB: predicated region body
PF: predicated region fallthrough
CT: control target
= control target key end

     0   :  { %v579_v3 = vmov 0.0   ;;  %vm580_vm0 = vmmov 0   ;;  %vm94_vm1 = vcmask 1041408   ;;  %v581_v9 = vmov 0   ;;  %s750_s0 = inlined_call_operand.vmem [shape: f32[20,128], index: 0, kind: input, shape index: {}]   ;;  %s751_s1 = inlined_call_operand.vmem [shape: bf16[40,20], index: 1, kind: input, shape index: {}]   ;;  %s752_s2 = inlined_call_operand.vmem [shape: f32[40,1], index: 2, kind: input, shape index: {}]   ;;  %s753_s3 = inlined_call_operand.vmem [shape: bf16[80,40], index: 3, kind: input, shape index: {}]   ;;  %s754_s4 = inlined_call_operand.vmem [shape: f32[80,1], index: 4, kind: input, shape index: {}]   ;;  %s755_s5 = inlined_call_operand.vmem [shape: bf16[2,80], index: 5, kind: input, shape index: {}]   ;;  %s756_s6 = inlined_call_operand.vmem [shape: f32[2,1], index: 6, kind: input, shape index: {}]   ;;  %s757_s7 = inlined_call_operand.hbm [shape: f32[2,128], index: 7, kind: output, shape index: {}]  }
   0x1   :  { %v28_v0 = vld [vmem:[%s750_s0] sm:$0xff]  ;;  %v29_v1 = vld [vmem:[%s750_s0 + $0x8] sm:$0xff]  ;;  %v30_v2 = vld [vmem:[%s750_s0 + $0x10] sm:$0xf]  ;;  %481 = vmatprep.subr.bf16.mxu0 %v579_v3  ;;  %497 = vmatprep.subr.bf16.mxu1 %v579_v3  ;;  %vm84_vm2 = vcmask 162816  }
   0x2   :  { %v31_v4 = vmax.f32 %v28_v0, 0.0  ;;  %v32_v5 = vmax.f32 %v29_v1, 0.0  ;;  %v33_v6 = vmax.f32 %v30_v2, 0.0  ;;  %485 = vmatprep.mubr.msk.bf16.mxu0 %vm580_vm0, %v579_v3  ;;  %503 = vmatprep.mubr.msk.bf16.mxu1 %vm580_vm0, %v579_v3  ;;  %v41_v10 = vld [vmem:[%s752_s2] sm:$0xff]  ;;  %v43_v11 = vld [vmem:[%s752_s2 + $0x10] sm:$0xff]  ;;  %v42_v13 = vld [vmem:[%s752_s2 + $0x8] sm:$0xff] }
   0x3   :  { %541 = vset.pattern.permute.xlu0 %v581_v9  ;;  %542 = vset.pattern.permute.xlu1 %v581_v9  ;;  %v44_v14 = vld [vmem:[%s752_s2 + $0x18] sm:$0xff]  ;;  %v543_v15 = vld [vmem:[%s751_s1] sm:$0xff]  }
   0x4   :  { %v34_v7 = vpack.c.bf16 %v32_v5, %v31_v4  ;;  %v35_v8 = vpack.c.bf16 %v33_v6, %v33_v6  ;;  %48 = vperm.xlu0 %541, %v41_v10   ;;  %58 = vperm.xlu1 %542, %v43_v11   ;;  %v45_v16 = vld [vmem:[%s752_s2 + $0x20] sm:$0xff] }
   0x5   :  { %v172_v17 = vld [vmem:[%s754_s4] sm:$0xff] }
   0x6   :  { %482 = vmatpush3.bf16.msra.mxu0 %v34_v7  ;;  %v96_v12 = vsel %vm94_vm1, %v35_v8, 0 }
   0x7   :  { %483 = vmatprep.subr.bf16.mxu0 %v579_v3 }
   0x8   :  { %53 = vperm.xlu0 %541, %v42_v13   ;;  %63 = vperm.xlu1 %542, %v44_v14  }
   0xa   :  { %484 = vmatpush3.bf16.msra.mxu0 %v96_v12 }
   0xb   :  { %523 = vmatprep.subr.bf16.mxu0 %v579_v3 }
   0xc   :  { %68 = vperm.xlu0 %541, %v45_v16  }
   0xd   :  { %486 = vmatmul.mubr.msk.bf16.vlgmr.msra.gmra.mrb[0].mxu0 %vm84_vm2, %v543_v15 }
   0xe   :  { %489 = vmatprep.mubr.msk.bf16.mxu0 %vm580_vm0, %v579_v3 }
   0xf   :  { %12 = vsyncpa [#allocation3], 0  ;;  %184 = vperm.xlu1 %542, %v172_v17   ;;  %v173_v18 = vld [vmem:[%s754_s4 + $0x8] sm:$0xff]  ;;  %v174_v19 = vld [vmem:[%s754_s4 + $0x10] sm:$0xff]  ;;  %vm273_vm3 = vcmask 1043456   ;;  %vm257_vm4 = vcmask 326656  }
  0x10   :  { %v544_v20 = vld [vmem:[%s751_s1 + $0x8] sm:$0xff]   ;;  %189 = vperm.xlu0 %541, %v173_v18   ;;  %v175_v21 = vld [vmem:[%s754_s4 + $0x18] sm:$0xff]  ;;  %v176_v22 = vld [vmem:[%s754_s4 + $0x20] sm:$0xff]  ;;  %vm372_vm5 = vcmask 654336   ;;  %s582_s26 = smov [#allocation2]  }
  0x11   :  { %v177_v23 = vld [vmem:[%s754_s4 + $0x28] sm:$0xff]  ;;  %v178_v24 = vld [vmem:[%s754_s4 + $0x30] sm:$0xff]  ;;  %v179_v26 = vld [vmem:[%s754_s4 + $0x38] sm:$0xff] }
  0x12   :  { %v545_v25 = vld [vmem:[%s751_s1 + $0x10] ss:$0 sps:$4 sm:$0xff]   ;;  %v180_v27 = vld [vmem:[%s754_s4 + $0x40] sm:$0xff]  ;;  %v181_v28 = vld [vmem:[%s754_s4 + $0x48] sm:$0xff] }
  0x13   :  { %194 = vperm.xlu1 %542, %v174_v19   ;;  %v366_v29 = vld [vmem:[%s756_s6] sm:$0x3]  ;;  %v547_v62 = vld [vmem:[%s753_s3 + $0x8] sm:$0xff]   ;;  %v548_v63 = vld [vmem:[%s753_s3 + $0x10] sm:$0xff]  }
  0x14   :  { %199 = vperm.xlu0 %541, %v175_v21   ;;  %v546_v61 = vld [vmem:[%s753_s3] sm:$0xff]   ;;  %v549_v0 = vld [vmem:[%s753_s3 + $0x18] sm:$0xff]  }
  0x15   :  { %490 = vmatmul.mubr.msk.bf16.gmra.mrb[4].mxu0 %vm84_vm2, %v544_v20  ;;  %v550_v1 = vld [vmem:[%s753_s3 + $0x20] sm:$0xff]  }
  0x16   :  { %493 = vmatprep.mubr.msk.bf16.mxu0 %vm580_vm0, %v579_v3 }
  0x17   :  { %204 = vperm.xlu1 %542, %v176_v22  }
  0x18   :  { %209 = vperm.xlu0 %541, %v177_v23  }
  0x1b   :  { %214 = vperm.xlu1 %542, %v178_v24  }
  0x1c   :  { %219 = vperm.xlu0 %541, %v179_v26  }
  0x1d   :  { %494 = vmatmul.mubr.msk.bf16.gmra.mrb[8].mxu0 %vm84_vm2, %v545_v25 }
  0x1e   :  { %533 = vmatprep.mubr.msk.bf16.mxu0 %vm580_vm0, %v579_v3 }
  0x1f   :  { %224 = vperm.xlu1 %542, %v180_v27  }
  0x20   :  { %229 = vperm.xlu0 %541, %v181_v28  }
  0x23   :  { %369 = vperm.xlu1 %542, %v366_v29  }
  0x83   :  { %v49_v30 = vpop.permute.xlu0 %48  ;;  %v59_v38 = vpop.permute.xlu1 %58 }
  0x87   :  { %v54_v34 = vpop.permute.xlu0 %53  ;;  %v64_v45 = vpop.permute.xlu1 %63 }
  0x8b   :  { %v69_v52 = vpop.permute.xlu0 %68 }
  0x8e   :  { %v185_v2 = vpop.permute.xlu1 %184 }
  0x8f   :  { %v190_v7 = vpop.permute.xlu0 %189 }
  0x92   :  { %v195_v14 = vpop.permute.xlu1 %194 }
  0x93   :  { %v200_v18 = vpop.permute.xlu0 %199 }
  0x96   :  { %v205_v25 = vpop.permute.xlu1 %204 }
  0x97   :  { %v210_v29 = vpop.permute.xlu0 %209 }
  0xe0   :  { %v132_v31 = vpop.f32.mrb[0].mxu0 }
  0xe1   :  { %v133_v32 = vadd.f32 %v132_v31, %v49_v30  ;;  %v487_v33 = vpop.f32.mrb[1].mxu0 }
  0xe2   :  { %v135_v35 = vpop.f32.mrb[2].mxu0 }
  0xe3   :  { %v136_v36 = vadd.f32 %v135_v35, %v54_v34  ;;  %v488_v37 = vpop.f32.mrb[3].mxu0  ;;  %v154_v39 = vmax.f32 %v133_v32, 0.0 }
  0xe5   :  { %v155_v40 = vmax.f32 %v136_v36, 0.0  ;;  %v215_v36 = vpop.permute.xlu1 %214 }
  0xe7   :  { %v159_v41 = vpack.c.bf16 %v155_v40, %v154_v39  ;;  %v220_v40 = vpop.permute.xlu0 %219 }
  0xe8   :  { %v140_v42 = vpop.f32.mrb[4].mxu0 }
  0xe9   :  { %v141_v43 = vadd.f32 %v140_v42, %v59_v38  ;;  %v491_v44 = vpop.f32.mrb[5].mxu0  ;;  %498 = vmatpush3.bf16.msra.mxu1 %v159_v41 }
  0xea   :  { %v143_v46 = vpop.f32.mrb[6].mxu0  ;;  %499 = vmatprep.subr.bf16.mxu1 %v579_v3 }
  0xeb   :  { %v144_v47 = vadd.f32 %v143_v46, %v64_v45  ;;  %v492_v48 = vpop.f32.mrb[7].mxu0  ;;  %v156_v49 = vmax.f32 %v141_v43, 0.0 }
  0xed   :  { %v157_v50 = vmax.f32 %v144_v47, 0.0  ;;  %v225_v47 = vpop.permute.xlu1 %224 }
  0xef   :  { %v160_v51 = vpack.c.bf16 %v157_v50, %v156_v49 }
  0xf0   :  { %v148_v53 = vpop.f32.mrb[8].mxu0 }
  0xf1   :  { %v149_v54 = vadd.f32 %v148_v53, %v69_v52  ;;  %v495_v55 = vpop.f32.mrb[9].mxu0  ;;  %500 = vmatpush3.bf16.msra.mxu1 %v160_v51  ;;  %v230_v51 = vpop.permute.xlu0 %229 }
  0xf2   :  { %v151_v56 = vpop.f32.mrb[10].mxu0  ;;  %501 = vmatprep.subr.bf16.mxu1 %v579_v3 }
  0xf3   :  { %v158_v57 = vmax.f32 %v149_v54, 0.0  ;;  %v496_v58 = vpop.f32.mrb[11].mxu0 }
  0xf4   :  { %v365_v58 = vld [vmem:[%s755_s5] sm:$0x1]  ;;  %s437_s5 = sshll.u32 %s582_s26, 4  ;;  %s438_s5 = int_to_ptr.vmem [resolvable:$true] %s437_s5 }
  0xf5   :  { %v161_v59 = vpack.c.bf16 %v158_v57, %v158_v57  ;;  %s555_s27 = scalar_lea.vmem %s438_s5, 32  ;;  %p560_p1 = scmp.lt.s32.totalorder %s438_s5, %s438_s5 }
  0xf6   :  { %p556_p0 = scmp.ne.s32.totalorder %s438_s5, %s555_s27  ;;  %p561_p2 = scmp.lt.s32.totalorder %s555_s27, %s555_s27 }
  0xf7   :  { %v275_v60 = vsel %vm273_vm3, %v161_v59, 0  ;;  %v370_v59 = vpop.permute.xlu1 %369 }
  0xf8   :  { %502 = vmatpush3.bf16.msra.mxu1 %v275_v60  ;;  %p562_p3 = por %p561_p2, %p560_p1 }
  0xfa   :  { %p563_p4 = pnand %p562_p3, %p556_p0 }
  0xfb   :  { %504 = vmatmul.mubr.msk.bf16.vlgmr.msra.gmra.mrb[0].mxu1 %vm257_vm4, %v546_v61 }
  0xfc   :  { %507 = vmatprep.mubr.msk.bf16.mxu1 %vm580_vm0, %v579_v3 }
 0x103   :  { %508 = vmatmul.mubr.msk.bf16.gmra.mrb[4].mxu1 %vm257_vm4, %v547_v62 }
 0x104   :  { %511 = vmatprep.mubr.msk.bf16.mxu1 %vm580_vm0, %v579_v3 }
 0x10b   :  { %512 = vmatmul.mubr.msk.bf16.gmra.mrb[8].mxu1 %vm257_vm4, %v548_v63 }
 0x10c   :  { %515 = vmatprep.mubr.msk.bf16.mxu1 %vm580_vm0, %v579_v3 }
 0x113   :  { %516 = vmatmul.mubr.msk.bf16.gmra.mrb[12].mxu1 %vm257_vm4, %v549_v0 }
 0x114   :  { %519 = vmatprep.mubr.msk.bf16.mxu1 %vm580_vm0, %v579_v3 }
 0x11b   :  { %520 = vmatmul.mubr.msk.bf16.gmra.mrb[16].mxu1 %vm257_vm4, %v550_v1 }
 0x1ce   :  { %v311_v4 = vpop.f32.mrb[0].mxu1 }
 0x1cf   :  { %v312_v5 = vadd.f32 %v311_v4, %v185_v2  ;;  %v505_v6 = vpop.f32.mrb[1].mxu1 }
 0x1d0   :  { %v314_v8 = vpop.f32.mrb[2].mxu1 }
 0x1d1   :  { %v315_v9 = vadd.f32 %v314_v8, %v190_v7  ;;  %v506_v10 = vpop.f32.mrb[3].mxu1  ;;  %v350_v11 = vmax.f32 %v312_v5, 0.0 }
 0x1d3   :  { %v351_v12 = vmax.f32 %v315_v9, 0.0 }
 0x1d5   :  { %v360_v13 = vpack.c.bf16 %v351_v12, %v350_v11 }
 0x1d6   :  { %v319_v15 = vpop.f32.mrb[4].mxu1 }
 0x1d7   :  { %v320_v16 = vadd.f32 %v319_v15, %v195_v14  ;;  %v509_v17 = vpop.f32.mrb[5].mxu1  ;;  %524 = vmatpush3.bf16.msra.mxu0 %v360_v13 }
 0x1d8   :  { %v322_v19 = vpop.f32.mrb[6].mxu1  ;;  %525 = vmatprep.subr.bf16.mxu0 %v579_v3 }
 0x1d9   :  { %v323_v20 = vadd.f32 %v322_v19, %v200_v18  ;;  %v510_v21 = vpop.f32.mrb[7].mxu1  ;;  %v352_v22 = vmax.f32 %v320_v16, 0.0 }
 0x1db   :  { %v353_v23 = vmax.f32 %v323_v20, 0.0 }
 0x1dd   :  { %v361_v24 = vpack.c.bf16 %v353_v23, %v352_v22 }
 0x1de   :  { %v327_v26 = vpop.f32.mrb[8].mxu1 }
 0x1df   :  { %v328_v27 = vadd.f32 %v327_v26, %v205_v25  ;;  %v513_v28 = vpop.f32.mrb[9].mxu1  ;;  %526 = vmatpush3.bf16.msra.mxu0 %v361_v24 }
 0x1e0   :  { %v330_v30 = vpop.f32.mrb[10].mxu1  ;;  %527 = vmatprep.subr.bf16.mxu0 %v579_v3 }
 0x1e1   :  { %v331_v31 = vadd.f32 %v330_v30, %v210_v29  ;;  %v514_v32 = vpop.f32.mrb[11].mxu1  ;;  %v354_v33 = vmax.f32 %v328_v27, 0.0 }
 0x1e3   :  { %v355_v34 = vmax.f32 %v331_v31, 0.0 }
 0x1e5   :  { %v362_v35 = vpack.c.bf16 %v355_v34, %v354_v33 }
 0x1e6   :  { %v335_v37 = vpop.f32.mrb[12].mxu1 }
 0x1e7   :  { %v336_v38 = vadd.f32 %v335_v37, %v215_v36  ;;  %v517_v39 = vpop.f32.mrb[13].mxu1  ;;  %528 = vmatpush3.bf16.msra.mxu0 %v362_v35 }
 0x1e8   :  { %v338_v41 = vpop.f32.mrb[14].mxu1  ;;  %529 = vmatprep.subr.bf16.mxu0 %v579_v3 }
 0x1e9   :  { %v339_v42 = vadd.f32 %v338_v41, %v220_v40  ;;  %v518_v43 = vpop.f32.mrb[15].mxu1  ;;  %v356_v44 = vmax.f32 %v336_v38, 0.0 }
 0x1eb   :  { %v357_v45 = vmax.f32 %v339_v42, 0.0 }
 0x1ed   :  { %v363_v46 = vpack.c.bf16 %v357_v45, %v356_v44 }
 0x1ee   :  { %v343_v48 = vpop.f32.mrb[16].mxu1 }
 0x1ef   :  { %v344_v49 = vadd.f32 %v343_v48, %v225_v47  ;;  %v521_v50 = vpop.f32.mrb[17].mxu1  ;;  %530 = vmatpush3.bf16.msra.mxu0 %v363_v46 }
 0x1f0   :  { %v346_v52 = vpop.f32.mrb[18].mxu1  ;;  %531 = vmatprep.subr.bf16.mxu0 %v579_v3 }
 0x1f1   :  { %v347_v53 = vadd.f32 %v346_v52, %v230_v51  ;;  %v522_v54 = vpop.f32.mrb[19].mxu1  ;;  %v358_v55 = vmax.f32 %v344_v49, 0.0 }
 0x1f3   :  { %v359_v56 = vmax.f32 %v347_v53, 0.0 }
 0x1f5   :  { %v364_v57 = vpack.c.bf16 %v359_v56, %v358_v55 }
 0x1f7   :  { %532 = vmatpush3.bf16.msra.mxu0 %v364_v57 }
 0x1fa   :  { %534 = vmatmul.mubr.msk.bf16.vlgmr.msra.gmra.mrb[12].mxu0 %vm372_vm5, %v365_v58 }
 0x2cd   :  { %v410_v60 = vpop.f32.mrb[12].mxu0 }
 0x2ce   :  { %v411_v61 = vadd.f32 %v410_v60, %v370_v59  ;;  %v535_v62 = vpop.f32.mrb[13].mxu0 }
 0x2cf   :  { %v413_v63 = vpop.f32.mrb[14].mxu0 }
 0x2d0   :  { %v416_v0 = vmin.f32 %v411_v61, 20.0  ;;  %v536_v1 = vpop.f32.mrb[15].mxu0  ;;  %vm428_vm7 = vcmp.gt.f32.partialorder %v411_v61, 20.0 }
 0x2d2   :  { %v417_v3 = vmul.f32 1.442695, %v416_v0 }
 0x2d4   :  { %551 = vpow2.f32 %v417_v3 }
 0x2de   :  { %v552_v2 = vpop.eup %551 }
 0x2df   :  { %v419_v4 = vadd.f32 1.0, %v552_v2  ;;  %v422_v5 = vmul.f32 -0.5, %v552_v2  ;;  %v425_v7 = vand.u32 2147483647, %v552_v2 }
 0x2e1   :  { %553 = vlog2.f32 %v419_v4  ;;  %v423_v6 = vadd.f32 1.0, %v422_v5  ;;  %vm426_vm6 = vcmp.lt.f32.partialorder %v425_v7, 0.0004427343 }
 0x2e3   :  { %v424_v10 = vmul.f32 %v552_v2, %v423_v6 }
 0x2eb   :  { %v554_v8 = vpop.eup %553 }
 0x2ec   :  { %v421_v9 = vmul.f32 0.6931472, %v554_v8 }
 0x2ee   :  { %v427_v11 = vsel %vm426_vm6, %v424_v10, %v421_v9 }
 0x2ef   :  { %v429_v12 = vsel %vm428_vm7, %v411_v61, %v427_v11 }
 0x2f0   :  { %430 = vst [vmem:[#allocation2] sm:$0x3] %v429_v12 }
 0x2f1   :  { %566 = shalt.err (!%p563_p4)
}
 0x2f2   :  { %s567_s0 = scalar_lea.hbm %s757_s7, 32 }
 0x2f3   :  { %p568_p5 = scmp.ne.s32.totalorder %s757_s7, %s567_s0  ;;  %p571_p6 = scmp.lt.u32.totalorder %s567_s0, %s757_s7 }
 0x2f5   :  { %p573_p7 = pnand %p571_p6, %p568_p5 }
 0x2f7   :  { %576 = shalt.err (!%p573_p7)
}
 0x2f8   :  { %440 = dma.vmem_to_hbm [thread:$0]  %s438_s5, 32, %s757_s7, [#allocation3]  }
 0x2f9   :  { %577 = dma.done.wait [#allocation3], 32  }
 0x2fa   :  { %578 = vsyncadd [#allocation3], 4294967264 }
 0x2fb   :  { %444 = vsyncpa [#allocation3], 1 }

</bundles_post_ra>
